<compile_context>
chip_gen: v6e
topology: v6e:2x2x1
jax: 0.10.0
libtpu: 0.0.40
codegen_flags: <defaults>
</compile_context>

<pallas_src>
import jax
import jax.numpy as jnp
from jax.experimental import pallas as pl
from jax.experimental.pallas import tpu as pltpu


# ---------------------------------------------------------------------------
# Packed parameter-slab layout (rows, all segment starts are multiples of 8).
#   w0 : rows [  0,  20), cols [0,10)   -- dense0 weight  (20 -> 10)
#   b0 : row    24       , cols [0,10)  -- dense0 bias
#   w1 : rows [ 32, 160), cols [0,128)  -- dense1 weight, logical (10,10) zero-padded
#   b1 : row   160       , cols [0,128) -- dense1 bias,  logical (1,10) zero-padded
#   w2 : rows [168, 296), cols [0,128)  -- output weight, logical (10,2) zero-padded
#   b2 : row   296       , cols [0,128) -- output bias,   logical (1,2) zero-padded
# ---------------------------------------------------------------------------
SLAB_ROWS = 304
SLAB_COLS = 128

_W0_LO, _W0_HI = 0, 20
_B0_LO, _B0_HI = 24, 25
_W1_LO, _W1_HI = 32, 160
_B1_LO, _B1_HI = 160, 161
_W2_LO, _W2_HI = 168, 296
_B2_LO, _B2_HI = 296, 297


def _round_up(a, m):
    return ((a + m - 1) // m) * m


def pack_params(params):
    """Pack (w0,b0,w1,b1,w2,b2) into a single (304,128) f32 slab (zero-padded)."""
    w0, b0, w1, b1, w2, b2 = params
    slab = jnp.zeros((SLAB_ROWS, SLAB_COLS), jnp.float32)
    slab = slab.at[_W0_LO:_W0_HI, 0:10].set(w0)   # (20,10)
    slab = slab.at[_B0_LO:_B0_HI, 0:10].set(b0)   # (1,10)
    slab = slab.at[_W1_LO:_W1_LO + 10, 0:10].set(w1)  # (10,10) inside 128x128 block
    slab = slab.at[_B1_LO:_B1_HI, 0:10].set(b1)
    slab = slab.at[_W2_LO:_W2_LO + 10, 0:2].set(w2)   # (10,2) inside 128x128 block
    slab = slab.at[_B2_LO:_B2_HI, 0:2].set(b2)
    return slab


def mlp_kernel(p_ref, x_ref, o_ref):
    """One batch tile of the fused forward pass. p_ref is the resident weight slab."""
    cdt = x_ref.dtype
    x = x_ref[...]                                            # (TB, 20)

    # dense0 + ReLU   (padded output lanes 10..127 stay exactly 0 after ReLU)
    h0 = jnp.dot(x, p_ref[_W0_LO:_W0_HI, :],
                 preferred_element_type=jnp.float32)
    h0 = jnp.maximum(h0 + p_ref[_B0_LO:_B0_HI, :].astype(jnp.float32), 0.0)

    # Dropout(0.5): identity in eval/inference mode.
    # TODO(synk): training-mode dropout (mask + 2x scale) not implemented; eval semantics.

    # dense1 + ReLU   (w1 block is zero-padded, so padded lanes of h0 contribute 0)
    h1 = jnp.dot(h0.astype(cdt), p_ref[_W1_LO:_W1_HI, :],
                 preferred_element_type=jnp.float32)
    h1 = jnp.maximum(h1 + p_ref[_B1_LO:_B1_HI, :].astype(jnp.float32), 0.0)

    # output logits (only lanes 0,1 meaningful)
    logits = jnp.dot(h1.astype(cdt), p_ref[_W2_LO:_W2_HI, :],
                     preferred_element_type=jnp.float32)
    logits = logits + p_ref[_B2_LO:_B2_HI, :].astype(jnp.float32)  # (TB, 128)

    # 2-class softmax, closed form: p0 = sigmoid(l0 - l1), p1 = 1 - p0.
    d = logits[:, 1:2] - logits[:, 0:1]                       # (TB, 1)
    p0 = pl.reciprocal(1.0 + jnp.exp(d), approx=False)        # sigmoid(l0 - l1)
    o_ref[...] = jnp.concatenate([p0, 1.0 - p0], axis=-1).astype(o_ref.dtype)


def my_simple_module_forward(x, params, *, max_tb=512, compute_dtype=jnp.float32):
    """Fused forward pass.  x: (B, 20) float32.  Returns (B, 2) float32 softmax probs.

    compute_dtype=jnp.bfloat16 is recommended on v5e for large B (f32 accumulation kept).
    """
    slab = pack_params(params).astype(compute_dtype)
    x = x.astype(compute_dtype)

    B = x.shape[0]
    # Batch tile: multiple of 8 sublanes, capped (x tile at 512x20 f32 = 40 KB).
    TB = min(max_tb, _round_up(max(B, 1), 8))
    B_pad = _round_up(B, TB)
    if B_pad != B:
        x = jnp.pad(x, ((0, B_pad - B), (0, 0)))
    grid = (B_pad // TB,)

    out = pl.pallas_call(
        mlp_kernel,
        out_shape=jax.ShapeDtypeStruct((B_pad, 2), jnp.float32),
        grid=grid,
        in_specs=[
            # Packed weight slab: constant block index -> DMA'd once, VMEM-resident.
            pl.BlockSpec((SLAB_ROWS, SLAB_COLS), lambda i: (0, 0)),
            # x streamed over the batch.
            pl.BlockSpec((TB, 20), lambda i: (i, 0)),
        ],
        # Output lane width 2 is negligible traffic; TB multiple of 8 keeps sublane
        # alignment for both the x loads and the output stores.
        out_specs=pl.BlockSpec((TB, 2), lambda i: (i, 0)),
        compiler_params=pltpu.CompilerParams(
            dimension_semantics=("parallel",),   # shards grid steps across v7x's 2 TCs
        ),
    )(slab, x)
    return out[:B]


def reference_forward(x, params):
    """Pure-JAX reference for correctness checking."""
    w0, b0, w1, b1, w2, b2 = params
    h0 = jnp.maximum(x @ w0 + b0, 0.0)
    h1 = jnp.maximum(h0 @ w1 + b1, 0.0)
    logits = h1 @ w2 + b2
    return jax.nn.softmax(logits, axis=-1)


def init_params(key, num_units=10):
    """Deterministic synthetic parameters matching nn.Linear shapes (stored as (in, out))."""
    ks = jax.random.split(key, 6)

    def linear_init(kw, kb, fan_in, fan_out):
        bound = 1.0 / jnp.sqrt(fan_in)
        w = jax.random.uniform(kw, (fan_in, fan_out), jnp.float32, -bound, bound)
        b = jax.random.uniform(kb, (1, fan_out), jnp.float32, -bound, bound)
        return w, b

    w0, b0 = linear_init(ks[0], ks[1], 20, num_units)   # dense0: Linear(20, num_units)
    w1, b1 = linear_init(ks[2], ks[3], num_units, 10)   # dense1: Linear(num_units, 10)
    w2, b2 = linear_init(ks[4], ks[5], 10, 2)           # output: Linear(10, 2)
    return (w0, b0, w1, b1, w2, b2)


if __name__ == "__main__":
    key = jax.random.PRNGKey(0)
    k_x, k_p = jax.random.split(key)
    params = init_params(k_p, num_units=10)

    # Small batch (single grid step), matches the PyTorch module's tiny test size.
    B = 8
    x = jax.random.normal(k_x, (B, 20), dtype=jnp.float32)
    out = jax.block_until_ready(my_simple_module_forward(x, params))
    assert out.shape == (B, 2)
    assert jnp.allclose(jnp.sum(out, axis=-1), 1.0, atol=1e-5)
    ref = reference_forward(x, params)
    assert jnp.allclose(out, ref, atol=1e-5), float(jnp.max(jnp.abs(out - ref)))

    # Larger batch exercising the streamed batch grid (+ padding + parallel axis).
    B2 = 1030
    x2 = jax.random.normal(k_x, (B2, 20), dtype=jnp.float32)
    out2 = jax.block_until_ready(my_simple_module_forward(x2, params))
    assert out2.shape == (B2, 2)
    ref2 = reference_forward(x2, params)
    assert jnp.allclose(out2, ref2, atol=1e-5), float(jnp.max(jnp.abs(out2 - ref2)))

    print("KERNEL_OK")
</pallas_src>

<mosaic_0001>
module attributes {stable_mosaic.version = 11 : i64} {
  func.func @mlp_kernel(%arg0: i32, %arg1: memref<304x128xf32, #tpu.memory_space<vmem>>, %arg2: memref<8x20xf32, #tpu.memory_space<vmem>>, %arg3: memref<8x2xf32, #tpu.memory_space<vmem>>) attributes {dimension_semantics = [#tpu.dimension_semantics<parallel>], iteration_bounds = array<i64: 1>, scalar_prefetch = 0 : i64, scratch_operands = 0 : i64, tpu.core_type = #tpu.core_type<tc>, window_params = [{pipeline_mode = #tpu.pipeline_mode<synchronous>, transform_indices = @transform_0, window_bounds = array<i64: 304, 128>}, {transform_indices = @transform_1, window_bounds = array<i64: 8, 20>}, {transform_indices = @transform_2, window_bounds = array<i64: 8, 2>}]} {
    %c0 = arith.constant 0 : index
    %c0_0 = arith.constant 0 : index
    %0 = vector.load %arg2[%c0, %c0_0] : memref<8x20xf32, #tpu.memory_space<vmem>>, vector<8x20xf32>
    %c0_1 = arith.constant 0 : index
    %c0_2 = arith.constant 0 : index
    %1 = vector.load %arg1[%c0_1, %c0_2] : memref<304x128xf32, #tpu.memory_space<vmem>>, vector<20x128xf32>
    %cst = arith.constant dense<0.000000e+00> : vector<8x128xf32>
    %2 = tpu.matmul %0, %1, %cst {dimension_numbers = #tpu.dot_dimension_numbers<[1], [0], [0], [1], [0, 0, 1, 1], [], []>} : vector<8x20xf32>, vector<20x128xf32>, vector<8x128xf32> -> vector<8x128xf32>
    %c24 = arith.constant 24 : index
    %c0_3 = arith.constant 0 : index
    %3 = vector.load %arg1[%c24, %c0_3] : memref<304x128xf32, #tpu.memory_space<vmem>>, vector<1x128xf32>
    %4 = vector.broadcast %3 : vector<1x128xf32> to vector<8x128xf32>
    %5 = arith.addf %2, %4 : vector<8x128xf32>
    %cst_4 = arith.constant 0.000000e+00 : f32
    %6 = vector.broadcast %cst_4 : f32 to vector<8x128xf32>
    %7 = arith.maximumf %5, %6 : vector<8x128xf32>
    %c32 = arith.constant 32 : index
    %c0_5 = arith.constant 0 : index
    %8 = vector.load %arg1[%c32, %c0_5] : memref<304x128xf32, #tpu.memory_space<vmem>>, vector<128x128xf32>
    %cst_6 = arith.constant dense<0.000000e+00> : vector<8x128xf32>
    %9 = tpu.matmul %7, %8, %cst_6 {dimension_numbers = #tpu.dot_dimension_numbers<[1], [0], [0], [1], [0, 0, 1, 1], [], []>} : vector<8x128xf32>, vector<128x128xf32>, vector<8x128xf32> -> vector<8x128xf32>
    %c160 = arith.constant 160 : index
    %c0_7 = arith.constant 0 : index
    %10 = vector.load %arg1[%c160, %c0_7] : memref<304x128xf32, #tpu.memory_space<vmem>>, vector<1x128xf32>
    %11 = vector.broadcast %10 : vector<1x128xf32> to vector<8x128xf32>
    %12 = arith.addf %9, %11 : vector<8x128xf32>
    %cst_8 = arith.constant 0.000000e+00 : f32
    %13 = vector.broadcast %cst_8 : f32 to vector<8x128xf32>
    %14 = arith.maximumf %12, %13 : vector<8x128xf32>
    %c168 = arith.constant 168 : index
    %c0_9 = arith.constant 0 : index
    %15 = vector.load %arg1[%c168, %c0_9] : memref<304x128xf32, #tpu.memory_space<vmem>>, vector<128x128xf32>
    %cst_10 = arith.constant dense<0.000000e+00> : vector<8x128xf32>
    %16 = tpu.matmul %14, %15, %cst_10 {dimension_numbers = #tpu.dot_dimension_numbers<[1], [0], [0], [1], [0, 0, 1, 1], [], []>} : vector<8x128xf32>, vector<128x128xf32>, vector<8x128xf32> -> vector<8x128xf32>
    %c296 = arith.constant 296 : index
    %c0_11 = arith.constant 0 : index
    %17 = vector.load %arg1[%c296, %c0_11] : memref<304x128xf32, #tpu.memory_space<vmem>>, vector<1x128xf32>
    %18 = vector.broadcast %17 : vector<1x128xf32> to vector<8x128xf32>
    %19 = arith.addf %16, %18 : vector<8x128xf32>
    %20 = vector.extract_strided_slice %19 {offsets = [0, 1], sizes = [8, 1], strides = [1, 1]} : vector<8x128xf32> to vector<8x1xf32>
    %21 = vector.extract_strided_slice %19 {offsets = [0, 0], sizes = [8, 1], strides = [1, 1]} : vector<8x128xf32> to vector<8x1xf32>
    %22 = arith.subf %20, %21 : vector<8x1xf32>
    %23 = math.exp %22 : vector<8x1xf32>
    %cst_12 = arith.constant 1.000000e+00 : f32
    %24 = vector.broadcast %cst_12 : f32 to vector<8x1xf32>
    %25 = arith.addf %24, %23 : vector<8x1xf32>
    %26 = tpu.reciprocal %25 : vector<8x1xf32> -> vector<8x1xf32>
    %cst_13 = arith.constant 1.000000e+00 : f32
    %27 = vector.broadcast %cst_13 : f32 to vector<8x1xf32>
    %28 = arith.subf %27, %26 : vector<8x1xf32>
    %29 = tpu.concatenate %26, %28 in 1 : vector<8x1xf32>, vector<8x1xf32> -> vector<8x2xf32>
    %c0_14 = arith.constant 0 : index
    %c0_15 = arith.constant 0 : index
    %30 = vector.load %arg3[%c0_14, %c0_15] : memref<8x2xf32, #tpu.memory_space<vmem>>, vector<8x2xf32>
    tpu.vector_store %arg3[%c0_14, %c0_15], %29 {strides = array<i32>} : memref<8x2xf32, #tpu.memory_space<vmem>>, vector<8x2xf32>,
    return
  }
  func.func @transform_0(%arg0: i32) -> (i32, i32) {
    %c0_i32 = arith.constant 0 : i32
    %c0_i32_0 = arith.constant 0 : i32
    %c0_i32_1 = arith.constant 0 : i32
    return %c0_i32, %c0_i32_0 : i32, i32
  }
  func.func @transform_1(%arg0: i32) -> (i32, i32) {
    %c0_i32 = arith.constant 0 : i32
    %c0_i32_0 = arith.constant 0 : i32
    return %arg0, %c0_i32 : i32, i32
  }
  func.func @transform_2(%arg0: i32) -> (i32, i32) {
    %c0_i32 = arith.constant 0 : i32
    %c0_i32_0 = arith.constant 0 : i32
    return %arg0, %c0_i32 : i32, i32
  }
}

</mosaic_0001>

<bundles_post_ra>
// kernel: tpu_custom_call.1
= control target key start
LH: loop header
LB: loop body
LE: loop exit
PB: predicated region body
PF: predicated region fallthrough
CT: control target
= control target key end

     0   :  { %7 = vsyncpa [#allocation3], 0  ;;  %s583_s0 = inlined_call_operand.hbm [shape: f32[304,128], index: 0, kind: input, shape index: {}]   ;;  %s584_s1 = inlined_call_operand.hbm [shape: f32[8,20], index: 1, kind: input, shape index: {}]   ;;  %s585_s2 = inlined_call_operand.vmem [shape: f32[8,2], index: 2, kind: output, shape index: {}]  }
   0x1   :  { %8 = vsyncpa [#allocation5], 0  ;;  %s510_s9 = smov [#allocation2]  }
   0x2   :  { %s14_s10 = sshll.u32 %s510_s9, 4  ;;  %s15_s10 = int_to_ptr.vmem [resolvable:$true] %s14_s10 }
   0x3   :  { %s474_s11 = scalar_lea.vmem %s15_s10, 4864  ;;  %p479_p1 = scmp.lt.s32.totalorder %s15_s10, %s15_s10 }
   0x4   :  { %p475_p0 = scmp.ne.s32.totalorder %s15_s10, %s474_s11  ;;  %p480_p2 = scmp.lt.s32.totalorder %s474_s11, %s474_s11 }
   0x6   :  { %p481_p3 = por %p480_p2, %p479_p1 }
   0x8   :  { %p482_p4 = pnand %p481_p3, %p475_p0 }
   0xa   :  { %485 = shalt.err (!%p482_p4)
}
   0xb   :  { %s511_s12 = smov 128   ;;  %s512_s13 = smov 8  }
   0xc   :  { %20 = dma.hbm_to_vmem [thread:$0]  %s583_s0, 4864, %s15_s10, [#allocation3], %s511_s12, %s511_s12, %s512_s13  }
   0xd   :  { %s513_s16 = smov [#allocation4]  }
   0xe   :  { %s27_s17 = sshll.u32 %s513_s16, 4  ;;  %s28_s17 = int_to_ptr.vmem [resolvable:$true] %s27_s17 }
   0xf   :  { %s494_s18 = scalar_lea.vmem %s28_s17, 128  ;;  %p499_p6 = scmp.lt.s32.totalorder %s28_s17, %s28_s17 }
  0x10   :  { %p495_p5 = scmp.ne.s32.totalorder %s28_s17, %s494_s18  ;;  %p500_p7 = scmp.lt.s32.totalorder %s494_s18, %s494_s18 }
  0x12   :  { %p501_p8 = por %p500_p7, %p499_p6 }
  0x14   :  { %p502_p9 = pnand %p501_p8, %p495_p5 }
  0x16   :  { %505 = shalt.err (!%p502_p9)
}
  0x17   :  { %30 = dma.hbm_to_vmem [thread:$0]  %s584_s1, 128, %s28_s17, [#allocation5]  }
  0x18   :  { %506 = dma.done.wait [#allocation3], 4864  }
  0x19   :  { %507 = vsyncadd [#allocation3], 4294962432 }
  0x1a   :  { %508 = dma.done.wait [#allocation5], 128  }
  0x1b   :  { %509 = vsyncadd [#allocation5], 4294967168  ;;  %v514_v0 = vmov 0.0   ;;  %vm515_vm0 = vmmov 0   ;;  %vm50_vm1 = vcmask 1043456   ;;  %v39_v2 = vld [vmem:[#allocation2 + $0x8] sm:$0xff] }
  0x1c   :  { %375 = vmatprep.subr.mxu0 %v514_v0  ;;  %381 = vmatprep.mubr.msk.f32.mxu0 %vm515_vm0, %v514_v0  ;;  %v40_v1 = vld [vmem:[#allocation2 + $0x10] sm:$0xf]  ;;  %v140_v3 = vld [vmem:[#allocation2 + $0x98] sm:$0xff]  ;;  %v38_v5 = vld [vmem:[#allocation2] sm:$0xff]  ;;  %vm46_vm2 = vcmask 162816   ;;  %s516_s0 = smov 1  }
  0x1d   :  { %384 = vmatprep.subr.mxu1 %v514_v0  ;;  %416 = vmatprep.mubr.msk.f32.mxu1 %vm515_vm0, %v514_v0  ;;  %v139_v4 = vld [vmem:[#allocation2 + $0x90] sm:$0xff]  ;;  %v138_v7 = vld [vmem:[#allocation2 + $0x88] sm:$0xff]  ;;  %v137_v8 = vld [vmem:[#allocation2 + $0x80] sm:$0xff]  ;;  %s517_s1 = smov 127   ;;  %vm322_vm3 = vcmask 7168   ;;  %vm324_vm4 = vcmask 15360  }
  0x1e   :  { %376 = vmatpush3.msk.msra.mxu0 %vm50_vm1, %v40_v1  ;;  %385 = vmatpush3.msra.mxu1 %v140_v3  ;;  %v37_v6 = vld [vmem:[#allocation4] sm:$0xff]  ;;  %v136_v9 = vld [vmem:[#allocation2 + $0x78] sm:$0xff]  ;;  %v134_v11 = vld [vmem:[#allocation2 + $0x68] sm:$0xff] }
  0x1f   :  { %377 = vmatprep.subr.mxu0 %v514_v0  ;;  %386 = vmatprep.subr.mxu1 %v514_v0  ;;  %v135_v10 = vld [vmem:[#allocation2 + $0x70] sm:$0xff]  ;;  %v133_v12 = vld [vmem:[#allocation2 + $0x60] sm:$0xff]  ;;  %v132_v13 = vld [vmem:[#allocation2 + $0x58] sm:$0xff] }
  0x20   :  { %378 = vmatpush3.msra.mxu0 %v39_v2  ;;  %387 = vmatpush3.msra.mxu1 %v139_v4  ;;  %v131_v14 = vld [vmem:[#allocation2 + $0x50] sm:$0xff]  ;;  %v130_v15 = vld [vmem:[#allocation2 + $0x48] sm:$0xff]  ;;  %v129_v16 = vld [vmem:[#allocation2 + $0x40] sm:$0xff] }
  0x21   :  { %379 = vmatprep.subr.mxu0 %v514_v0  ;;  %388 = vmatprep.subr.mxu1 %v514_v0  ;;  %v128_v17 = vld [vmem:[#allocation2 + $0x38] sm:$0xff]  ;;  %v127_v18 = vld [vmem:[#allocation2 + $0x30] sm:$0xff]  ;;  %v126_v19 = vld [vmem:[#allocation2 + $0x28] sm:$0xff] }
  0x22   :  { %380 = vmatpush3.msra.mxu0 %v38_v5  ;;  %389 = vmatpush3.msra.mxu1 %v138_v7  ;;  %v125_v20 = vld [vmem:[#allocation2 + $0x20] sm:$0xff]  ;;  %v231_v22 = vld [vmem:[#allocation2 + $0x118] sm:$0xff]  ;;  %v230_v23 = vld [vmem:[#allocation2 + $0x110] sm:$0xff] }
  0x23   :  { %382 = vmatmul.mubr.msk.f32.vlgmr.msra.gmra.mxu0 %vm46_vm2, %v37_v6  ;;  %390 = vmatprep.subr.mxu1 %v514_v0  ;;  %v232_v21 = vld [vmem:[#allocation2 + $0x120] sm:$0xff]  ;;  %v229_v24 = vld [vmem:[#allocation2 + $0x108] sm:$0xff]  ;;  %v227_v26 = vld [vmem:[#allocation2 + $0xf8] sm:$0xff] }
  0x24   :  { %419 = vmatprep.subr.mxu0 %v514_v0  ;;  %391 = vmatpush3.msra.mxu1 %v137_v8  ;;  %v228_v25 = vld [vmem:[#allocation2 + $0x100] sm:$0xff]  ;;  %v226_v27 = vld [vmem:[#allocation2 + $0xf0] sm:$0xff]  ;;  %v225_v28 = vld [vmem:[#allocation2 + $0xe8] sm:$0xff] }
  0x25   :  { %451 = vmatprep.mubr.msk.f32.mxu0 %vm515_vm0, %v514_v0  ;;  %392 = vmatprep.subr.mxu1 %v514_v0  ;;  %v224_v29 = vld [vmem:[#allocation2 + $0xe0] sm:$0xff]  ;;  %v223_v30 = vld [vmem:[#allocation2 + $0xd8] sm:$0xff]  ;;  %v222_v31 = vld [vmem:[#allocation2 + $0xd0] sm:$0xff] }
  0x26   :  { %393 = vmatpush3.msra.mxu1 %v136_v9  ;;  %420 = vmatpush3.msra.mxu0 %v232_v21  ;;  %v221_v32 = vld [vmem:[#allocation2 + $0xc8] sm:$0xff]  ;;  %v220_v33 = vld [vmem:[#allocation2 + $0xc0] sm:$0xff]  ;;  %v332_v34 = vld [vmem:[#allocation2 + $0x18] ss:$0 sm:$0xff] }
  0x27   :  { %394 = vmatprep.subr.mxu1 %v514_v0  ;;  %421 = vmatprep.subr.mxu0 %v514_v0  ;;  %v219_v39 = vld [vmem:[#allocation2 + $0xb8] sm:$0xff]  ;;  %v218_v40 = vld [vmem:[#allocation2 + $0xb0] sm:$0xff]  ;;  %v217_v41 = vld [vmem:[#allocation2 + $0xa8] sm:$0xff] }
  0x28   :  { %395 = vmatpush3.msra.mxu1 %v135_v10  ;;  %422 = vmatpush3.msra.mxu0 %v231_v22  ;;  %v335_v42 = vld [vmem:[#allocation2 + $0xa0] ss:$0 sm:$0xff]  ;;  %v336_v47 = vld [vmem:[#allocation2 + $0x128] ss:$0 sm:$0xff] }
  0x29   :  { %396 = vmatprep.subr.mxu1 %v514_v0  ;;  %423 = vmatprep.subr.mxu0 %v514_v0 }
  0x2a   :  { %397 = vmatpush3.msra.mxu1 %v134_v11  ;;  %424 = vmatpush3.msra.mxu0 %v230_v23 }
  0x2b   :  { %398 = vmatprep.subr.mxu1 %v514_v0  ;;  %425 = vmatprep.subr.mxu0 %v514_v0 }
  0x2c   :  { %399 = vmatpush3.msra.mxu1 %v133_v12  ;;  %426 = vmatpush3.msra.mxu0 %v229_v24 }
  0x2d   :  { %400 = vmatprep.subr.mxu1 %v514_v0  ;;  %427 = vmatprep.subr.mxu0 %v514_v0 }
  0x2e   :  { %401 = vmatpush3.msra.mxu1 %v132_v13  ;;  %428 = vmatpush3.msra.mxu0 %v228_v25 }
  0x2f   :  { %402 = vmatprep.subr.mxu1 %v514_v0  ;;  %429 = vmatprep.subr.mxu0 %v514_v0 }
  0x30   :  { %403 = vmatpush3.msra.mxu1 %v131_v14  ;;  %430 = vmatpush3.msra.mxu0 %v227_v26 }
  0x31   :  { %404 = vmatprep.subr.mxu1 %v514_v0  ;;  %431 = vmatprep.subr.mxu0 %v514_v0 }
  0x32   :  { %405 = vmatpush3.msra.mxu1 %v130_v15  ;;  %432 = vmatpush3.msra.mxu0 %v226_v27 }
  0x33   :  { %406 = vmatprep.subr.mxu1 %v514_v0  ;;  %433 = vmatprep.subr.mxu0 %v514_v0 }
  0x34   :  { %407 = vmatpush3.msra.mxu1 %v129_v16  ;;  %434 = vmatpush3.msra.mxu0 %v225_v28 }
  0x35   :  { %408 = vmatprep.subr.mxu1 %v514_v0  ;;  %435 = vmatprep.subr.mxu0 %v514_v0 }
  0x36   :  { %409 = vmatpush3.msra.mxu1 %v128_v17  ;;  %436 = vmatpush3.msra.mxu0 %v224_v29 }
  0x37   :  { %410 = vmatprep.subr.mxu1 %v514_v0  ;;  %437 = vmatprep.subr.mxu0 %v514_v0 }
  0x38   :  { %411 = vmatpush3.msra.mxu1 %v127_v18  ;;  %438 = vmatpush3.msra.mxu0 %v223_v30 }
  0x39   :  { %412 = vmatprep.subr.mxu1 %v514_v0  ;;  %439 = vmatprep.subr.mxu0 %v514_v0 }
  0x3a   :  { %413 = vmatpush3.msra.mxu1 %v126_v19  ;;  %440 = vmatpush3.msra.mxu0 %v222_v31 }
  0x3b   :  { %414 = vmatprep.subr.mxu1 %v514_v0  ;;  %441 = vmatprep.subr.mxu0 %v514_v0 }
  0x3c   :  { %415 = vmatpush3.msra.mxu1 %v125_v20  ;;  %442 = vmatpush3.msra.mxu0 %v221_v32 }
  0x3d   :  { %443 = vmatprep.subr.mxu0 %v514_v0 }
  0x3e   :  { %444 = vmatpush3.msra.mxu0 %v220_v33 }
  0x3f   :  { %445 = vmatprep.subr.mxu0 %v514_v0 }
  0x40   :  { %446 = vmatpush3.msra.mxu0 %v219_v39 }
  0x41   :  { %447 = vmatprep.subr.mxu0 %v514_v0 }
  0x42   :  { %448 = vmatpush3.msra.mxu0 %v218_v40 }
  0x43   :  { %449 = vmatprep.subr.mxu0 %v514_v0 }
  0x44   :  { %450 = vmatpush3.msra.mxu0 %v217_v41 }
  0xe3   :  { %v120_v35 = vpop.f32.mrf.mxu0 }
  0xe4   :  { %v121_v36 = vadd.f32 %v332_v34, %v120_v35 }
  0xe5   :  { %v383_v37 = vpop.f32.mrf.mxu0 }
  0xe6   :  { %v124_v38 = vmax.f32 %v121_v36, 0.0 }
  0xe8   :  { %417 = vmatmul.mubr.f32.vlgmr.msra.gmra.mxu1 %v124_v38 }
 0x1a8   :  { %v212_v43 = vpop.f32.mrf.mxu1 }
 0x1a9   :  { %v213_v44 = vadd.f32 %v335_v42, %v212_v43 }
 0x1aa   :  { %v418_v45 = vpop.f32.mrf.mxu1 }
 0x1ab   :  { %v216_v46 = vmax.f32 %v213_v44, 0.0 }
 0x1ad   :  { %452 = vmatmul.mubr.f32.vlgmr.msra.gmra.mxu0 %v216_v46 }
 0x26d   :  { %v304_v48 = vpop.f32.mrf.mxu0 }
 0x26e   :  { %v305_v49 = vadd.f32 %v336_v47, %v304_v48 }
 0x26f   :  { %v453_v50 = vpop.f32.mrf.mxu0 }
 0x270   :  { %309 = vrot.lane.b32.xlu0 %v305_v49, %s516_s0 }
 0x2e2   :  { %v310_v51 = vpop.permute.xlu0 %309 }
 0x2e3   :  { %v312_v52 = vsub.f32 %v305_v49, %v310_v51 }
 0x2e5   :  { %v313_v53 = vmul.f32 1.442695, %v312_v52 }
 0x2e7   :  { %462 = vpow2.f32 %v313_v53 }
 0x2f4   :  { %v463_v54 = vpop.eup %462 }
 0x2f5   :  { %v315_v55 = vadd.f32 1.0, %v463_v54 }
 0x2f7   :  { %464 = vrcp.f32 %v315_v55 }
 0x304   :  { %v465_v56 = vpop.eup %464 }
 0x305   :  { %319 = vrot.lane.b32.xlu0 %v465_v56, %s517_s1  ;;  %v317_v57 = vsub.f32 1.0, %v465_v56 }
 0x377   :  { %v320_v58 = vpop.permute.xlu0 %319 }
 0x378   :  { %v323_v59 = vsel %vm322_vm3, %v320_v58, %v317_v57 }
 0x379   :  { %325 = vst.msk [vmem:[%s585_s2] sm:$0xff] %vm324_vm4, %v323_v59 }
 0x37a   :  { %330 = vsyncpa [#allocation3], 1 }
 0x37b   :  { %331 = vsyncpa [#allocation5], 1 }

</bundles_post_ra>
